<compile_context>
chip_gen: v7x
topology: tpu7x:2x2x1
jax: 0.10.0
libtpu: 0.0.40
codegen_flags: <defaults>
</compile_context>

<pallas_src>
import functools
import math

import jax
import jax.numpy as jnp
from jax.experimental import pallas as pl
from jax.experimental.pallas import tpu as pltpu


def _round_up(x: int, m: int) -> int:
    return ((x + m - 1) // m) * m


def _sublane_unit(dtype) -> int:
    """Native sublane packing: 8 for 32-bit, 16 for bf16, 32 for int8/fp8."""
    bits = jnp.dtype(dtype).itemsize * 8
    return max(8, (32 // bits) * 8)


def _pick_tile(padded_dim: int, unit: int, cap: int) -> int:
    """Largest t = d*unit with d | (padded_dim // unit) and t <= cap."""
    n = padded_dim // unit
    best = 1
    for d in range(1, n + 1):
        if n % d == 0 and d * unit <= cap:
            best = d
    return best * unit


# ----------------------------- kernels --------------------------------------


def _matmul_kernel_inplace(x_ref, w_ref, o_ref):
    """f32 output: the output block is resident across the k axis (its
    index_map ignores k), so accumulate straight into it — no scratch."""

    @pl.when(pl.program_id(2) == 0)
    def _():
        o_ref[...] = jnp.zeros_like(o_ref)

    o_ref[...] += jnp.dot(
        x_ref[...], w_ref[...], preferred_element_type=jnp.float32
    )


def _matmul_kernel_scratch(x_ref, w_ref, o_ref, acc_ref):
    """Low-precision output: f32 VMEM accumulator, cast on the last k step."""

    @pl.when(pl.program_id(2) == 0)
    def _():
        acc_ref[...] = jnp.zeros_like(acc_ref)

    acc_ref[...] += jnp.dot(
        x_ref[...], w_ref[...], preferred_element_type=jnp.float32
    )

    @pl.when(pl.program_id(2) == pl.num_programs(2) - 1)
    def _():
        o_ref[...] = acc_ref[...].astype(o_ref.dtype)


# ----------------------------- wrapper ---------------------------------------

_TM_MAX = 512
_TN_MAX = 512
_TK_MAX = 1024


@functools.partial(jax.jit, static_argnames=("n_out",))
def _linear_matmul(x2d: jax.Array, w_t: jax.Array, *, n_out: int) -> jax.Array:
    """x2d: (M, K) activations; w_t: (K_pad, N_pad) pre-transposed/padded
    weight (both pads are multiples of 128). Returns (M, n_out) = x @ W.T."""
    M, K = x2d.shape
    Kp, Np = w_t.shape
    assert Kp == _round_up(K, 128) and Np >= n_out

    out_dtype = jnp.result_type(x2d.dtype, w_t.dtype)

    sub = _sublane_unit(x2d.dtype)
    Mp = _round_up(M, sub)

    # Pad activations only when needed. Zero-padding along K is exact for the
    # contraction; padded M rows are sliced off below.
    if (Mp, Kp) != (M, K):
        x2d = jnp.pad(x2d, ((0, Mp - M), (0, Kp - K)))

    # Tiles divide the padded dims exactly -> no wasted zero-FLOP grid steps.
    tm = _pick_tile(Mp, sub, _TM_MAX)
    tn = _pick_tile(Np, 128, _TN_MAX)
    tk = _pick_tile(Kp, 128, _TK_MAX)

    in_itemsize = jnp.dtype(x2d.dtype).itemsize
    out_itemsize = jnp.dtype(out_dtype).itemsize
    use_scratch = out_dtype != jnp.float32

    # Double-buffered working set (+ accumulator if present), with headroom,
    # clamped to 64 MiB so it is safe on v7x's per-TC VMEM as well.
    vmem_bytes = 2 * (tm * tk + tk * tn) * in_itemsize
    vmem_bytes += 2 * tm * tn * out_itemsize
    if use_scratch:
        vmem_bytes += tm * tn * 4
    vmem_limit = int(max(32 << 20, min(64 << 20, 2 * vmem_bytes)))

    kernel = _matmul_kernel_scratch if use_scratch else _matmul_kernel_inplace
    scratch = [pltpu.VMEM((tm, tn), jnp.float32)] if use_scratch else []

    out = pl.pallas_call(
        kernel,
        out_shape=jax.ShapeDtypeStruct((Mp, Np), out_dtype),
        grid_spec=pltpu.PrefetchScalarGridSpec(
            num_scalar_prefetch=0,
            grid=(Mp // tm, Np // tn, Kp // tk),
            in_specs=[
                pl.BlockSpec((tm, tk), lambda i, j, k: (i, k)),  # x tile
                pl.BlockSpec((tk, tn), lambda i, j, k: (k, j)),  # W^T tile
            ],
            out_specs=pl.BlockSpec((tm, tn), lambda i, j, k: (i, j)),
            scratch_shapes=scratch,
        ),
        compiler_params=pltpu.CompilerParams(
            dimension_semantics=("parallel", "parallel", "arbitrary"),
            vmem_limit_bytes=vmem_limit,
        ),
        cost_estimate=pl.CostEstimate(
            flops=2 * M * K * n_out,
            transcendentals=0,
            bytes_accessed=(M * K + K * n_out) * in_itemsize
            + M * n_out * out_itemsize,
        ),
    )(x2d, w_t)

    if (Mp, Np) != (M, n_out):
        out = out[:M, :n_out]
    return out


# ----------------------------- module ----------------------------------------


class Linear:
    """JAX/Pallas port of the PyTorch no-bias Linear module.

    Weight is (out_features, in_features), Xavier std truncated at +/- 3*std,
    matching torch.nn.init.trunc_normal_(mean=0, std=std, a=-3*std, b=3*std).
    """

    def __init__(self, in_features: int, out_features: int, key: jax.Array,
                 dtype=jnp.float32):
        self.in_features = in_features
        self.out_features = out_features
        std = math.sqrt(2.0 / (in_features + out_features))
        self.weight = (
            jax.random.truncated_normal(
                key, -3.0, 3.0, (out_features, in_features), jnp.float32
            )
            * std
        ).astype(dtype)

        # Pre-transpose + pre-pad the (static) parameter ONCE so the per-call
        # path never touches W and the kernel runs the canonical MXU layout:
        # lane-dense along N, no per-step W-tile transpose.
        kp = _round_up(in_features, 128)
        np_ = _round_up(out_features, 128)
        w_t = jnp.transpose(self.weight)  # (K, N)
        self._weight_t = jnp.pad(
            w_t, ((0, kp - in_features), (0, np_ - out_features))
        )

    def __call__(self, x: jax.Array) -> jax.Array:
        lead = x.shape[:-1]
        assert x.shape[-1] == self.in_features
        x2d = x.reshape(-1, self.in_features)
        out = _linear_matmul(x2d, self._weight_t, n_out=self.out_features)
        return out.reshape(*lead, self.out_features)


if __name__ == "__main__":
    key = jax.random.PRNGKey(0)
    k_w, k_x = jax.random.split(key)

    in_features, out_features = 32, 64
    batch, seq = 2, 8

    lin = Linear(in_features, out_features, key=k_w)
    x = jax.random.normal(k_x, (batch, seq, in_features), dtype=jnp.float32)

    out = jax.block_until_ready(lin(x))

    # Reference: same einsum as the PyTorch forward.
    ref = jnp.einsum("oi,bsi->bso", lin.weight, x)
    assert out.shape == (batch, seq, out_features)
    assert jnp.allclose(out, ref, rtol=1e-5, atol=1e-5), \
        "Pallas linear mismatch vs reference"

    print("KERNEL_OK")
</pallas_src>

<mosaic_0001>
module attributes {stable_mosaic.version = 11 : i64} {
  func.func @_matmul_kernel_inplace(%arg0: i32, %arg1: i32, %arg2: i32, %arg3: memref<16x128xf32, #tpu.memory_space<vmem>>, %arg4: memref<128x128xf32, #tpu.memory_space<vmem>>, %arg5: memref<16x128xf32, #tpu.memory_space<vmem>>) attributes {dimension_semantics = [#tpu.dimension_semantics<parallel>, #tpu.dimension_semantics<parallel>, #tpu.dimension_semantics<arbitrary>], iteration_bounds = array<i64: 1, 1, 1>, scalar_prefetch = 0 : i64, scratch_operands = 0 : i64, tpu.core_type = #tpu.core_type<tc>, window_params = [{transform_indices = @transform_0, window_bounds = array<i64: 16, 128>}, {transform_indices = @transform_1, window_bounds = array<i64: 128, 128>}, {transform_indices = @transform_2, window_bounds = array<i64: 16, 128>}]} {
    %c0_i32 = arith.constant 0 : i32
    %0 = arith.cmpi eq, %arg2, %c0_i32 : i32
    %1 = arith.extui %0 : i1 to i32
    %c0_i32_0 = arith.constant 0 : i32
    %2 = arith.cmpi ne, %1, %c0_i32_0 : i32
    scf.if %2 {
      %cst_8 = arith.constant 0.000000e+00 : f32
      %9 = vector.broadcast %cst_8 : f32 to vector<16x128xf32>
      %c0_9 = arith.constant 0 : index
      %c0_10 = arith.constant 0 : index
      %10 = vector.load %arg5[%c0_9, %c0_10] : memref<16x128xf32, #tpu.memory_space<vmem>>, vector<16x128xf32>
      tpu.vector_store %arg5[%c0_9, %c0_10], %9 {strides = array<i32>} : memref<16x128xf32, #tpu.memory_space<vmem>>, vector<16x128xf32>,
    } else {
    }
    %c0 = arith.constant 0 : index
    %c0_1 = arith.constant 0 : index
    %3 = vector.load %arg5[%c0, %c0_1] : memref<16x128xf32, #tpu.memory_space<vmem>>, vector<16x128xf32>
    %c0_2 = arith.constant 0 : index
    %c0_3 = arith.constant 0 : index
    %4 = vector.load %arg3[%c0_2, %c0_3] : memref<16x128xf32, #tpu.memory_space<vmem>>, vector<16x128xf32>
    %c0_4 = arith.constant 0 : index
    %c0_5 = arith.constant 0 : index
    %5 = vector.load %arg4[%c0_4, %c0_5] : memref<128x128xf32, #tpu.memory_space<vmem>>, vector<128x128xf32>
    %cst = arith.constant dense<0.000000e+00> : vector<16x128xf32>
    %6 = tpu.matmul %4, %5, %cst {dimension_numbers = #tpu.dot_dimension_numbers<[1], [0], [0], [1], [0, 0, 1, 1], [], []>} : vector<16x128xf32>, vector<128x128xf32>, vector<16x128xf32> -> vector<16x128xf32>
    %7 = arith.addf %3, %6 : vector<16x128xf32>
    %c0_6 = arith.constant 0 : index
    %c0_7 = arith.constant 0 : index
    %8 = vector.load %arg5[%c0_6, %c0_7] : memref<16x128xf32, #tpu.memory_space<vmem>>, vector<16x128xf32>
    tpu.vector_store %arg5[%c0_6, %c0_7], %7 {strides = array<i32>} : memref<16x128xf32, #tpu.memory_space<vmem>>, vector<16x128xf32>,
    return
  }
  func.func @transform_0(%arg0: i32, %arg1: i32, %arg2: i32) -> (i32, i32) {
    %c0_i32 = arith.constant 0 : i32
    return %arg0, %arg2 : i32, i32
  }
  func.func @transform_1(%arg0: i32, %arg1: i32, %arg2: i32) -> (i32, i32) {
    %c0_i32 = arith.constant 0 : i32
    return %arg2, %arg1 : i32, i32
  }
  func.func @transform_2(%arg0: i32, %arg1: i32, %arg2: i32) -> (i32, i32) {
    %c0_i32 = arith.constant 0 : i32
    return %arg0, %arg1 : i32, i32
  }
}

</mosaic_0001>

<bundles_post_ra>
// kernel: _linear_matmul.1
= control target key start
LH: loop header
LB: loop body
LE: loop exit
PB: predicated region body
PF: predicated region fallthrough
CT: control target
= control target key end

     0   :  { %7 = vsyncpa [#allocation3], 0  ;;  %s341_s0 = inlined_call_operand.vmem [shape: f32[16,128], index: 0, kind: input, shape index: {}]   ;;  %s342_s1 = inlined_call_operand.hbm [shape: f32[128,128], index: 1, kind: input, shape index: {}]   ;;  %s343_s2 = inlined_call_operand.hbm [shape: f32[16,128], index: 2, kind: output, shape index: {}]  }
   0x1   :  { %8 = vsyncpa [#allocation4], 0  ;;  %s286_s9 = smov [#allocation2]   ;;  %s238_s13 = scalar_lea.hbm %s342_s1, 2048 }
   0x2   :  { %s16_s10 = sshll.u32 %s286_s9, 4  ;;  %p239_p0 = scmp.ne.s32.totalorder %s342_s1, %s238_s13  ;;  %s17_s10 = int_to_ptr.vmem [resolvable:$true] %s16_s10 }
   0x3   :  { %p242_p1 = scmp.lt.u32.totalorder %s238_s13, %s342_s1 }
   0x5   :  { %p244_p2 = pnand %p242_p1, %p239_p0 }
   0x7   :  { %247 = shalt.err (!%p244_p2)
}
   0x8   :  { %s248_s18 = scalar_lea.vmem %s17_s10, 2048  ;;  %p253_p4 = scmp.lt.s32.totalorder %s17_s10, %s17_s10 }
   0x9   :  { %p249_p3 = scmp.ne.s32.totalorder %s17_s10, %s248_s18  ;;  %p254_p5 = scmp.lt.s32.totalorder %s248_s18, %s248_s18 }
   0xb   :  { %p255_p6 = por %p254_p5, %p253_p4 }
   0xd   :  { %p256_p7 = pnand %p255_p6, %p249_p3 }
   0xf   :  { %259 = shalt.err (!%p256_p7)
}
  0x10   :  { %s287_s19 = smov 128   ;;  %s288_s20 = smov 8  }
  0x11   :  { %22 = dma.hbm_to_vmem [thread:$0]  %s342_s1, 2048, %s17_s10, [#allocation3], %s287_s19, %s287_s19, %s288_s20  }
  0x12   :  { %282 = dma.done.wait [#allocation3], 2048  }
  0x13   :  { %283 = vsyncadd [#allocation3], 4294965248  ;;  %v36_v0 = vld [vmem:[#allocation2] sm:$0xff]  ;;  %v37_v1 = vld [vmem:[#allocation2 + $0x8] sm:$0xff]  ;;  %s289_s26 = smov [#allocation5]  }
  0x14   :  { %v38_v2 = vld [vmem:[#allocation2 + $0x10] sm:$0xff]  ;;  %v201_v3 = vpack.c.bf16 %v37_v1, %v36_v0  ;;  %v39_v4 = vld [vmem:[#allocation2 + $0x18] sm:$0xff]  ;;  %v40_v6 = vld [vmem:[#allocation2 + $0x20] sm:$0xff]  ;;  %s136_s27 = sshll.u32 %s289_s26, 4  ;;  %s137_s27 = int_to_ptr.vmem [resolvable:$true] %s136_s27 }
  0x15   :  { %v205_v5 = vpack.c.bf16 %v39_v4, %v38_v2  ;;  %v41_v7 = vld [vmem:[#allocation2 + $0x28] sm:$0xff]  ;;  %v34_v9 = vld [vmem:[%s341_s0] sm:$0xff]  ;;  %v42_v10 = vld [vmem:[#allocation2 + $0x30] sm:$0xff]  ;;  %s260_s28 = scalar_lea.vmem %s137_s27, 256  ;;  %p265_p9 = scmp.lt.s32.totalorder %s137_s27, %s137_s27 }
  0x16   :  { %202 = vmatprep.subr.bf16.mxu0 %v201_v3  ;;  %v209_v8 = vpack.c.bf16 %v41_v7, %v40_v6  ;;  %v43_v11 = vld [vmem:[#allocation2 + $0x38] sm:$0xff]  ;;  %198 = vmatprep.mubr.f32.mxu0 %v34_v9  ;;  %v44_v13 = vld [vmem:[#allocation2 + $0x40] sm:$0xff]  ;;  %v45_v14 = vld [vmem:[#allocation2 + $0x48] sm:$0xff]  ;;  %p261_p8 = scmp.ne.s32.totalorder %s137_s27, %s260_s28  ;;  %p266_p10 = scmp.lt.s32.totalorder %s260_s28, %s260_s28 }
  0x17   :  { %204 = vmatpush3.bf16.msra.mxu0 %v201_v3  ;;  %v213_v12 = vpack.c.bf16 %v43_v11, %v42_v10  ;;  %v217_v15 = vpack.c.bf16 %v45_v14, %v44_v13  ;;  %v46_v16 = vld [vmem:[#allocation2 + $0x50] sm:$0xff]  ;;  %v47_v17 = vld [vmem:[#allocation2 + $0x58] sm:$0xff]  ;;  %v48_v19 = vld [vmem:[#allocation2 + $0x60] sm:$0xff] }
  0x18   :  { %206 = vmatprep.subr.bf16.mxu0 %v205_v5  ;;  %v221_v18 = vpack.c.bf16 %v47_v17, %v46_v16  ;;  %v49_v20 = vld [vmem:[#allocation2 + $0x68] sm:$0xff]  ;;  %v50_v22 = vld [vmem:[#allocation2 + $0x70] sm:$0xff]  ;;  %v51_v23 = vld [vmem:[#allocation2 + $0x78] sm:$0xff]  ;;  %p267_p11 = por %p266_p10, %p265_p9 }
  0x19   :  { %v225_v21 = vpack.c.bf16 %v49_v20, %v48_v19  ;;  %v229_v24 = vpack.c.bf16 %v51_v23, %v50_v22  ;;  %v35_v25 = vld [vmem:[%s341_s0 + $0x8] sm:$0xff] }
  0x1a   :  { %p268_p12 = pnand %p267_p11, %p261_p8 }
  0x1b   :  { %208 = vmatpush3.bf16.msra.mxu0 %v205_v5 }
  0x1c   :  { %210 = vmatprep.subr.bf16.mxu0 %v209_v8 }
  0x1f   :  { %212 = vmatpush3.bf16.msra.mxu0 %v209_v8 }
  0x20   :  { %214 = vmatprep.subr.bf16.mxu0 %v213_v12 }
  0x23   :  { %216 = vmatpush3.bf16.msra.mxu0 %v213_v12 }
  0x24   :  { %218 = vmatprep.subr.bf16.mxu0 %v217_v15 }
  0x27   :  { %220 = vmatpush3.bf16.msra.mxu0 %v217_v15 }
  0x28   :  { %222 = vmatprep.subr.bf16.mxu0 %v221_v18 }
  0x2b   :  { %224 = vmatpush3.bf16.msra.mxu0 %v221_v18 }
  0x2c   :  { %226 = vmatprep.subr.bf16.mxu0 %v225_v21 }
  0x2f   :  { %228 = vmatpush3.bf16.msra.mxu0 %v225_v21 }
  0x30   :  { %230 = vmatprep.subr.bf16.mxu0 %v229_v24 }
  0x33   :  { %232 = vmatpush3.bf16.msra.mxu0 %v229_v24 }
  0x36   :  { %199 = vmatmul.mubr.f32.vlgmr.msra.gmra.mrb[0].mxu0 %v35_v25 }
 0x109   :  { %v200_v26 = vpop.f32.mrb[0].mxu0 }
 0x10a   :  { %v118_v27 = vpop.f32.mrb[1].mxu0  ;;  %130 = vst [vmem:[#allocation5 + $0x8] sm:$0xff] %v200_v26 }
 0x10b   :  { %129 = vst [vmem:[#allocation5] sm:$0xff] %v118_v27 }
 0x10c   :  { %271 = shalt.err (!%p268_p12)
}
 0x10d   :  { %s272_s3 = scalar_lea.hbm %s343_s2, 256 }
 0x10e   :  { %p273_p13 = scmp.ne.s32.totalorder %s343_s2, %s272_s3  ;;  %p276_p0 = scmp.lt.u32.totalorder %s272_s3, %s343_s2 }
 0x110   :  { %p278_p1 = pnand %p276_p0, %p273_p13 }
 0x112   :  { %281 = shalt.err (!%p278_p1)
}
 0x113   :  { %142 = dma.vmem_to_hbm [thread:$0]  %s137_s27, 256, %s343_s2, [#allocation4], %s287_s19, %s287_s19, %s288_s20  }
 0x114   :  { %284 = dma.done.wait [#allocation4], 256  }
 0x115   :  { %285 = vsyncadd [#allocation4], 4294967040 }
 0x116   :  { %146 = vsyncpa [#allocation3], 1 }
 0x117   :  { %147 = vsyncpa [#allocation4], 1 }

</bundles_post_ra>
